<compile_context>
chip_gen: v5e
topology: v5e:2x2
jax: 0.10.0
libtpu: 0.0.40
codegen_flags: <defaults>
</compile_context>

<pallas_src>
import functools

import jax
import jax.numpy as jnp
from jax import lax
from jax.experimental import pallas as pl
from jax.experimental.pallas import tpu as pltpu

_EPS = 1e-6
_ROW_ALIGN = 256            # token-tile alignment (keeps packed sublane dim % 8 == 0)
_ROW_TILE_CEIL = 16384      # absolute ceiling on tokens per grid step
_HEADROOM = 4 * 1024 * 1024


def _round_up(x, m):
    return ((x + m - 1) // m) * m


def _vmem_limit_bytes():
    """Per-generation scoped-VMEM limit: ~3/4 of physical, capped at 96 MiB.
    -> ~48 MiB on v7x (64 MiB physical), 96 MiB on v5e/v6e (128 MiB physical)."""
    try:
        cap = int(getattr(pltpu.get_tpu_info(), "vmem_capacity_bytes"))
    except Exception:  # robust fallback (assume the smallest, v7x-sized, VMEM)
        cap = 64 * 1024 * 1024
    return min((cap * 3) // 4, 96 * 1024 * 1024)


# ---------------------------------------------------------------------------
# Kernels
# ---------------------------------------------------------------------------
def _final_layer_kernel(x_ref, w_ref, b_ref, o_ref, *, eps, inv_h):
    """General path. x_ref: (rt, H); w_ref: (H, D) resident; b_ref: (1, D) f32."""
    x = x_ref[...].astype(jnp.float32)
    mean = jnp.sum(x, axis=-1, keepdims=True) * inv_h
    centered = x - mean
    var = jnp.sum(centered * centered, axis=-1, keepdims=True) * inv_h
    xn = (centered * lax.rsqrt(var + eps)).astype(w_ref.dtype)   # native MXU dtype
    y = jnp.dot(xn, w_ref[...], preferred_element_type=jnp.float32)
    o_ref[...] = (y + b_ref[...]).astype(o_ref.dtype)


def _final_layer_packed_kernel(x_ref, w_ref, b_ref, bm_ref, o_ref, *, eps, inv_h):
    """Lane-packed path: pack = 128 // H tokens share one 128-lane register row.

    x_ref : (rt/pack, pack*H)   row-major repack of (rt, H)         (lane dense)
    w_ref : (pack*H, pack*D)    block-diagonal Linear weight, resident
    b_ref : (1, pack*D) f32     bias tiled per packed slot, resident
    bm_ref: (pack*H, pack*H)    block-of-ones segment-sum matrix, f32, resident
    o_ref : (rt/pack, pack*D)                                       (lane dense)
    """
    x = x_ref[...].astype(jnp.float32)
    bm = bm_ref[...]
    # Two INDEPENDENT stats matmuls (E[x], E[x^2]); precision pinned to HIGHEST
    # so the f32 segment sums are not silently run at bf16 input precision.
    s1 = jnp.dot(x, bm, preferred_element_type=jnp.float32,
                 precision=lax.Precision.HIGHEST)
    s2 = jnp.dot(x * x, bm, preferred_element_type=jnp.float32,
                 precision=lax.Precision.HIGHEST)
    mean = s1 * inv_h
    var = jnp.maximum(s2 * inv_h - mean * mean, 0.0)
    xn = ((x - mean) * lax.rsqrt(var + eps)).astype(w_ref.dtype)  # native MXU dtype
    y = jnp.dot(xn, w_ref[...], preferred_element_type=jnp.float32)
    o_ref[...] = (y + b_ref[...]).astype(o_ref.dtype)


# ---------------------------------------------------------------------------
# Host-side one-time parameter prep (no per-call transpose / cast in the kernel)
# ---------------------------------------------------------------------------
def prepare_final_layer_params(w, b, compute_dtype):
    """w: (out_dim, H) PyTorch Linear weight; b: (out_dim,).
    On v5e, passing compute_dtype=jnp.bfloat16 even for f32 activations trades
    negligible accuracy for a single-pass MXU matmul."""
    out_dim, hidden = w.shape
    wt = jnp.asarray(w, compute_dtype).T                       # (H, D)
    b32 = jnp.asarray(b, jnp.float32).reshape(1, out_dim)
    params = {"hidden": hidden, "out_dim": out_dim, "pack": 1, "w": wt, "b": b32}
    pack = 128 // hidden if (4 <= hidden < 128 and 128 % hidden == 0) else 1
    if pack > 1:
        params["pack"] = pack
        params["w_packed"] = jnp.kron(jnp.eye(pack, dtype=compute_dtype), wt)
        params["b_packed"] = jnp.tile(b32, (1, pack))                     # (1, pack*D)
        params["bm"] = jnp.kron(jnp.eye(pack, dtype=jnp.float32),
                                jnp.ones((hidden, hidden), jnp.float32))  # (pack*H,)*2
    return params


def _choose_row_tile(rows, hidden, out_dim, in_dtype, out_dtype,
                     resident_bytes, vmem_limit):
    """Largest VMEM-safe token tile (multiple of 256), counting double-buffered
    streamed blocks AND in-kernel f32 temporaries; then >=4 / even grid steps
    when there is enough work (v7x two-TC pipelining)."""
    in_b = jnp.dtype(in_dtype).itemsize
    out_b = jnp.dtype(out_dtype).itemsize
    per_token = (2 * hidden * in_b + 2 * out_dim * out_b      # double-buffered in/out
                 + 4 * hidden * 4 + 2 * out_dim * 4)          # f32 temporaries
    budget = max(vmem_limit - resident_bytes - _HEADROOM, 1 << 20)
    cap_rows = max(_ROW_ALIGN, (budget // per_token) // _ROW_ALIGN * _ROW_ALIGN)
    rt = min(_ROW_TILE_CEIL, cap_rows)
    if rt >= rows:
        return rows, 1                                         # single full-size block
    steps = pl.cdiv(rows, rt)
    if steps < 4:                                              # aim for >=2 steps per TC
        rt_alt = max(_ROW_ALIGN, _round_up(pl.cdiv(rows, 4), _ROW_ALIGN))
        if rt_alt < rt:
            rt = rt_alt
            steps = pl.cdiv(rows, rt)
    if steps > 1 and steps % 2 == 1:                           # avoid one idle TC on tail
        rt_alt = max(_ROW_ALIGN, _round_up(pl.cdiv(rows, steps + 1), _ROW_ALIGN))
        if rt_alt < rt and pl.cdiv(rows, rt_alt) % 2 == 0:
            rt = rt_alt
            steps = pl.cdiv(rows, rt)
    return rt, steps


# ---------------------------------------------------------------------------
# Forward
# ---------------------------------------------------------------------------
def final_layer_forward(x, c, params, *, eps=_EPS):
    """x: (B, N, H). c is accepted but unused (matches FinalLayer.forward)."""
    del c
    B, N, hidden = x.shape
    assert hidden == params["hidden"]
    out_dim, pack = params["out_dim"], params["pack"]
    rows = B * N
    x2d = x.reshape(rows, hidden)

    vmem_limit = _vmem_limit_bytes()
    use_packed = pack > 1 and rows % pack == 0

    if use_packed:
        w, b, bm = params["w_packed"], params["b_packed"], params["bm"]
        resident = (w.size * w.dtype.itemsize + b.size * b.dtype.itemsize
                    + bm.size * bm.dtype.itemsize)
    else:
        w, b, bm = params["w"], params["b"], None
        resident = w.size * w.dtype.itemsize + b.size * b.dtype.itemsize

    row_tile, _ = _choose_row_tile(rows, hidden, out_dim, x.dtype, x.dtype,
                                   resident, vmem_limit)

    cparams = pltpu.CompilerParams(dimension_semantics=("parallel",),
                                   vmem_limit_bytes=vmem_limit)
    cost = pl.CostEstimate(
        flops=2 * rows * hidden * out_dim,
        transcendentals=rows,
        bytes_accessed=int(rows * (hidden + out_dim) * x.dtype.itemsize
                           + w.size * w.dtype.itemsize + b.size * b.dtype.itemsize
                           + (bm.size * bm.dtype.itemsize if use_packed else 0)))

    if use_packed:
        lanes_in = pack * hidden                       # == 128 (lane dense loads)
        lanes_out = pack * out_dim                     # multiple of 128 -> dense vst
        rows_packed = rows // pack
        tile_p = max(row_tile // pack, 1)              # mult of 8, or full dim if grid==1
        grid = (pl.cdiv(rows_packed, tile_p),)
        xp = x2d.reshape(rows_packed, lanes_in)        # free row-major repack
        out_p = pl.pallas_call(
            functools.partial(_final_layer_packed_kernel, eps=eps, inv_h=1.0 / hidden),
            out_shape=jax.ShapeDtypeStruct((rows_packed, lanes_out), x.dtype),
            grid_spec=pltpu.PrefetchScalarGridSpec(
                num_scalar_prefetch=0,
                grid=grid,
                in_specs=[
                    pl.BlockSpec((tile_p, lanes_in), lambda i: (i, 0)),     # x (packed)
                    pl.BlockSpec((lanes_in, lanes_out), lambda i: (0, 0)),  # block-diag W
                    pl.BlockSpec((1, lanes_out), lambda i: (0, 0)),         # bias
                    pl.BlockSpec((lanes_in, lanes_in), lambda i: (0, 0)),   # segment sums
                ],
                out_specs=pl.BlockSpec((tile_p, lanes_out), lambda i: (i, 0)),
            ),
            compiler_params=cparams,
            cost_estimate=cost,
        )(xp, w, b, bm)
        out2d = out_p.reshape(rows, out_dim)           # free row-major unpack
    else:
        grid = (pl.cdiv(rows, row_tile),)              # ragged tail handled by Pallas
        out2d = pl.pallas_call(
            functools.partial(_final_layer_kernel, eps=eps, inv_h=1.0 / hidden),
            out_shape=jax.ShapeDtypeStruct((rows, out_dim), x.dtype),
            grid_spec=pltpu.PrefetchScalarGridSpec(
                num_scalar_prefetch=0,
                grid=grid,
                in_specs=[
                    pl.BlockSpec((row_tile, hidden), lambda i: (i, 0)),   # x row tile
                    pl.BlockSpec((hidden, out_dim), lambda i: (0, 0)),    # W^T resident
                    pl.BlockSpec((1, out_dim), lambda i: (0, 0)),         # bias
                ],
                out_specs=pl.BlockSpec((row_tile, out_dim), lambda i: (i, 0)),
            ),
            compiler_params=cparams,
            cost_estimate=cost,
        )(x2d, w, b)
        # TODO(synk): if profiling shows masked vst for out_dim < 128 is hot, pad W/b
        # to 128 output lanes (lane-dense stores) at the cost of ~3x output HBM writes.

    return out2d.reshape(B, N, out_dim)


# ---------------------------------------------------------------------------
# Reference + demo
# ---------------------------------------------------------------------------
def _reference(x, w, b, eps=_EPS):
    xf = x.astype(jnp.float32)
    mean = jnp.mean(xf, axis=-1, keepdims=True)
    var = jnp.mean((xf - mean) ** 2, axis=-1, keepdims=True)
    xn = (xf - mean) * lax.rsqrt(var + eps)
    y = jnp.einsum("bnh,oh->bno", xn, w.astype(jnp.float32),
                   precision=jax.lax.Precision.HIGHEST) + b.astype(jnp.float32)
    return y


if __name__ == "__main__":
    key = jax.random.PRNGKey(0)

    # --- Config 1: FinalLayer(hidden_size=32, patch_size=2, out_channels=4), f32 ---
    hidden_size, patch_size, out_channels = 32, 2, 4
    out_dim = patch_size * patch_size * patch_size * out_channels   # 32
    B, N = 2, 8
    k1, k2, k3, k4, k5 = jax.random.split(key, 5)
    x = jax.random.normal(k1, (B, N, hidden_size), dtype=jnp.float32) + 3.0  # nonzero mean
    c = jax.random.normal(k2, (B, hidden_size), dtype=jnp.float32)           # unused
    w = jax.random.normal(k3, (out_dim, hidden_size), dtype=jnp.float32) * 0.02
    b = jax.random.normal(k4, (out_dim,), dtype=jnp.float32) * 0.01

    params = prepare_final_layer_params(w, b, compute_dtype=x.dtype)
    y = final_layer_forward(x, c, params)
    jax.block_until_ready(y)
    y_ref = _reference(x, w, b)
    assert y.shape == (B, N, out_dim)
    assert jnp.allclose(y.astype(jnp.float32), y_ref, atol=2e-3, rtol=2e-3)

    # --- Config 2: hidden_size=128 (general path), bf16 activations/weights ---
    hidden2 = 128
    x2 = jax.random.normal(k5, (B, N, hidden2), dtype=jnp.float32).astype(jnp.bfloat16)
    w2 = (jax.random.normal(k3, (out_dim, hidden2), dtype=jnp.float32) * 0.02)
    b2 = jax.random.normal(k4, (out_dim,), dtype=jnp.float32) * 0.01
    params2 = prepare_final_layer_params(w2, b2, compute_dtype=x2.dtype)
    y2 = final_layer_forward(x2, c, params2)
    jax.block_until_ready(y2)
    y2_ref = _reference(x2, w2, b2)
    assert y2.shape == (B, N, out_dim)
    assert jnp.allclose(y2.astype(jnp.float32), y2_ref, atol=2e-2, rtol=2e-2)

    print("KERNEL_OK")
</pallas_src>

<mosaic_0001>
module attributes {stable_mosaic.version = 11 : i64} {
  func.func @_final_layer_packed_kernel(%arg0: i32, %arg1: memref<4x128xf32, #tpu.memory_space<vmem>>, %arg2: memref<128x128xf32, #tpu.memory_space<vmem>>, %arg3: memref<1x128xf32, #tpu.memory_space<vmem>>, %arg4: memref<128x128xf32, #tpu.memory_space<vmem>>, %arg5: memref<4x128xf32, #tpu.memory_space<vmem>>) attributes {dimension_semantics = [#tpu.dimension_semantics<parallel>], iteration_bounds = array<i64: 1>, scalar_prefetch = 0 : i64, scratch_operands = 0 : i64, tpu.core_type = #tpu.core_type<tc>, window_params = [{transform_indices = @transform_0, window_bounds = array<i64: 4, 128>}, {pipeline_mode = #tpu.pipeline_mode<synchronous>, transform_indices = @transform_1, window_bounds = array<i64: 128, 128>}, {pipeline_mode = #tpu.pipeline_mode<synchronous>, transform_indices = @transform_2, window_bounds = array<i64: 1, 128>}, {pipeline_mode = #tpu.pipeline_mode<synchronous>, transform_indices = @transform_3, window_bounds = array<i64: 128, 128>}, {transform_indices = @transform_4, window_bounds = array<i64: 4, 128>}]} {
    %c0 = arith.constant 0 : index
    %c0_0 = arith.constant 0 : index
    %0 = vector.load %arg1[%c0, %c0_0] : memref<4x128xf32, #tpu.memory_space<vmem>>, vector<4x128xf32>
    %c0_1 = arith.constant 0 : index
    %c0_2 = arith.constant 0 : index
    %1 = vector.load %arg4[%c0_1, %c0_2] : memref<128x128xf32, #tpu.memory_space<vmem>>, vector<128x128xf32>
    %cst = arith.constant dense<0.000000e+00> : vector<4x128xf32>
    %2 = tpu.matmul %0, %1, %cst {dimension_numbers = #tpu.dot_dimension_numbers<[1], [0], [0], [1], [0, 0, 1, 1], [], []>, precision = #tpu.contract_precision<fp32>} : vector<4x128xf32>, vector<128x128xf32>, vector<4x128xf32> -> vector<4x128xf32>
    %3 = arith.mulf %0, %0 : vector<4x128xf32>
    %cst_3 = arith.constant dense<0.000000e+00> : vector<4x128xf32>
    %4 = tpu.matmul %3, %1, %cst_3 {dimension_numbers = #tpu.dot_dimension_numbers<[1], [0], [0], [1], [0, 0, 1, 1], [], []>, precision = #tpu.contract_precision<fp32>} : vector<4x128xf32>, vector<128x128xf32>, vector<4x128xf32> -> vector<4x128xf32>
    %cst_4 = arith.constant 3.125000e-02 : f32
    %5 = vector.broadcast %cst_4 : f32 to vector<4x128xf32>
    %6 = arith.mulf %2, %5 : vector<4x128xf32>
    %cst_5 = arith.constant 3.125000e-02 : f32
    %7 = vector.broadcast %cst_5 : f32 to vector<4x128xf32>
    %8 = arith.mulf %4, %7 : vector<4x128xf32>
    %9 = arith.mulf %6, %6 : vector<4x128xf32>
    %10 = arith.subf %8, %9 : vector<4x128xf32>
    %cst_6 = arith.constant 0.000000e+00 : f32
    %11 = vector.broadcast %cst_6 : f32 to vector<4x128xf32>
    %12 = arith.maximumf %10, %11 : vector<4x128xf32>
    %13 = arith.subf %0, %6 : vector<4x128xf32>
    %cst_7 = arith.constant 9.99999997E-7 : f32
    %14 = vector.broadcast %cst_7 : f32 to vector<4x128xf32>
    %15 = arith.addf %12, %14 : vector<4x128xf32>
    %16 = math.rsqrt %15 : vector<4x128xf32>
    %17 = arith.mulf %13, %16 : vector<4x128xf32>
    %c0_8 = arith.constant 0 : index
    %c0_9 = arith.constant 0 : index
    %18 = vector.load %arg2[%c0_8, %c0_9] : memref<128x128xf32, #tpu.memory_space<vmem>>, vector<128x128xf32>
    %cst_10 = arith.constant dense<0.000000e+00> : vector<4x128xf32>
    %19 = tpu.matmul %17, %18, %cst_10 {dimension_numbers = #tpu.dot_dimension_numbers<[1], [0], [0], [1], [0, 0, 1, 1], [], []>} : vector<4x128xf32>, vector<128x128xf32>, vector<4x128xf32> -> vector<4x128xf32>
    %c0_11 = arith.constant 0 : index
    %c0_12 = arith.constant 0 : index
    %20 = vector.load %arg3[%c0_11, %c0_12] : memref<1x128xf32, #tpu.memory_space<vmem>>, vector<1x128xf32>
    %21 = vector.broadcast %20 : vector<1x128xf32> to vector<4x128xf32>
    %22 = arith.addf %19, %21 : vector<4x128xf32>
    %c0_13 = arith.constant 0 : index
    %c0_14 = arith.constant 0 : index
    %23 = vector.load %arg5[%c0_13, %c0_14] : memref<4x128xf32, #tpu.memory_space<vmem>>, vector<4x128xf32>
    tpu.vector_store %arg5[%c0_13, %c0_14], %22 {strides = array<i32>} : memref<4x128xf32, #tpu.memory_space<vmem>>, vector<4x128xf32>,
    return
  }
  func.func @transform_0(%arg0: i32) -> (i32, i32) {
    %c0_i32 = arith.constant 0 : i32
    %c0_i32_0 = arith.constant 0 : i32
    return %arg0, %c0_i32 : i32, i32
  }
  func.func @transform_1(%arg0: i32) -> (i32, i32) {
    %c0_i32 = arith.constant 0 : i32
    %c0_i32_0 = arith.constant 0 : i32
    %c0_i32_1 = arith.constant 0 : i32
    return %c0_i32, %c0_i32_0 : i32, i32
  }
  func.func @transform_2(%arg0: i32) -> (i32, i32) {
    %c0_i32 = arith.constant 0 : i32
    %c0_i32_0 = arith.constant 0 : i32
    %c0_i32_1 = arith.constant 0 : i32
    return %c0_i32, %c0_i32_0 : i32, i32
  }
  func.func @transform_3(%arg0: i32) -> (i32, i32) {
    %c0_i32 = arith.constant 0 : i32
    %c0_i32_0 = arith.constant 0 : i32
    %c0_i32_1 = arith.constant 0 : i32
    return %c0_i32, %c0_i32_0 : i32, i32
  }
  func.func @transform_4(%arg0: i32) -> (i32, i32) {
    %c0_i32 = arith.constant 0 : i32
    %c0_i32_0 = arith.constant 0 : i32
    return %arg0, %c0_i32 : i32, i32
  }
}

</mosaic_0001>

<bundles_post_ra>
// kernel: tpu_custom_call.1
= control target key start
LH: loop header
LB: loop body
LE: loop exit
PB: predicated region body
PF: predicated region fallthrough
CT: control target
= control target key end

     0   :  { %9 = vsyncpa [#allocation3], 0  ;;  %s1400_s0 = inlined_call_operand.hbm [shape: f32[4,128], index: 0, kind: input, shape index: {}]   ;;  %s1401_s1 = inlined_call_operand.hbm [shape: f32[128,128], index: 1, kind: input, shape index: {}]   ;;  %s1402_s2 = inlined_call_operand.vmem [shape: f32[1,128], index: 2, kind: input, shape index: {}]   ;;  %s1403_s3 = inlined_call_operand.hbm [shape: f32[128,128], index: 3, kind: input, shape index: {}]   ;;  %s1404_s4 = inlined_call_operand.hbm [shape: f32[4,128], index: 4, kind: output, shape index: {}]  }
   0x1   :  { %10 = vsyncpa [#allocation6], 0  ;;  %s27_s17 = sshll.u32 %s1401_s1, 4  ;;  %s28_s17 = int_to_ptr.hbm [resolvable:$true] %s27_s17 }
   0x2   :  { %11 = vsyncpa [#allocation4], 0  ;;  %s951_s18 = smov [#allocation5]   ;;  %s17_s22 = sshll.u32 %s1400_s0, 4  ;;  %s18_s22 = int_to_ptr.hbm [resolvable:$true] %s17_s22 }
   0x3   :  { %s29_s19 = sshll.u32 %s951_s18, 4  ;;  %s952_s23 = smov 128   ;;  %s30_s19 = int_to_ptr.vmem [resolvable:$true] %s29_s19 }
   0x4   :  { %s953_s24 = smov 8   ;;  %s954_s25 = smov [#allocation2]  }
   0x5   :  { %35 = dma.hbm_to_vmem [thread:$0]  %s28_s17, 2048, %s30_s19, [#allocation6], %s952_s23, %s952_s23, %s953_s24  }
   0x6   :  { %s19_s26 = sshll.u32 %s954_s25, 4  ;;  %s42_s29 = sshll.u32 %s1403_s3, 4  ;;  %s20_s26 = int_to_ptr.vmem [resolvable:$true] %s19_s26  ;;  %s43_s29 = int_to_ptr.hbm [resolvable:$true] %s42_s29 }
   0x7   :  { %22 = dma.hbm_to_vmem [thread:$0]  %s18_s22, 64, %s20_s26, [#allocation3]  }
   0x8   :  { %s955_s1 = smov [#allocation7]  }
   0x9   :  { %s44_s30 = sshll.u32 %s955_s1, 4  ;;  %s45_s30 = int_to_ptr.vmem [resolvable:$true] %s44_s30 }
   0xa   :  { %50 = dma.hbm_to_vmem [thread:$0]  %s43_s29, 2048, %s45_s30, [#allocation6], %s952_s23, %s952_s23, %s953_s24  }
   0xb   :  { %945 = dma.done.wait [#allocation3], 64  }
   0xc   :  { %946 = vsyncadd [#allocation3], 4294967232 }
   0xd   :  { %947 = dma.done.wait [#allocation6], 4096  }
   0xe   :  { %948 = vsyncadd [#allocation6], 4294963200  ;;  %v79_v0 = vld [vmem:[#allocation7 + $0x78] sm:$0xff]  ;;  %v78_v1 = vld [vmem:[#allocation7 + $0x70] sm:$0xff]  ;;  %s956_s5 = smov [#allocation8]   ;;  %s829_s9 = sshll.u32 %s1404_s4, 4  ;;  %s830_s9 = int_to_ptr.hbm [resolvable:$true] %s829_s9 }
   0xf   :  { %v77_v2 = vld [vmem:[#allocation7 + $0x68] sm:$0xff]  ;;  %v991_v3 = vand.u32 4294901760, %v79_v0  ;;  %v993_v4 = vand.u32 4294901760, %v78_v1  ;;  %v76_v6 = vld [vmem:[#allocation7 + $0x60] sm:$0xff]  ;;  %v75_v7 = vld [vmem:[#allocation7 + $0x58] sm:$0xff]  ;;  %s827_s6 = sshll.u32 %s956_s5, 4  ;;  %s828_s6 = int_to_ptr.vmem [resolvable:$true] %s827_s6 }
  0x10   :  { %v995_v5 = vand.u32 4294901760, %v77_v2  ;;  %v74_v8 = vld [vmem:[#allocation7 + $0x50] sm:$0xff]  ;;  %v997_v9 = vand.u32 4294901760, %v76_v6  ;;  %v999_v10 = vand.u32 4294901760, %v75_v7  ;;  %v73_v12 = vld [vmem:[#allocation7 + $0x48] sm:$0xff]  ;;  %v72_v13 = vld [vmem:[#allocation7 + $0x40] sm:$0xff] }
  0x11   :  { %v1001_v11 = vand.u32 4294901760, %v74_v8  ;;  %81 = vmatpush.msra.mxu0 %v991_v3  ;;  %v1005_v14 = vsub.f32 %v79_v0, %v991_v3  ;;  %v1008_v15 = vsub.f32 %v78_v1, %v993_v4  ;;  %277 = vmatpush.msra.mxu3 %v991_v3  ;;  %v1014_v17 = vand.u32 4294901760, %v73_v12  ;;  %v71_v21 = vld [vmem:[#allocation7 + $0x38] sm:$0xff]  ;;  %v70_v34 = vld [vmem:[#allocation7 + $0x30] sm:$0xff]  ;;  %v69_v35 = vld [vmem:[#allocation7 + $0x28] sm:$0xff] }
  0x12   :  { %v1012_v16 = vsub.f32 %v77_v2, %v995_v5  ;;  %v1017_v18 = vsub.f32 %v76_v6, %v997_v9  ;;  %v1020_v19 = vsub.f32 %v75_v7, %v999_v10  ;;  %v1036_v25 = vand.u32 4294901760, %v72_v13  ;;  %v68_v42 = vld [vmem:[#allocation7 + $0x20] sm:$0xff]  ;;  %v67_v48 = vld [vmem:[#allocation7 + $0x18] sm:$0xff]  ;;  %v66_v54 = vld [vmem:[#allocation7 + $0x10] sm:$0xff] }
  0x13   :  { %v1023_v20 = vsub.f32 %v74_v8, %v1001_v11  ;;  %224 = vmatpush.msra.mxu2 %v1005_v14  ;;  %83 = vmatpush.msra.mxu0 %v993_v4  ;;  %v1028_v22 = vand.u32 4294901760, %v1005_v14  ;;  %v1031_v23 = vand.u32 4294901760, %v1008_v15  ;;  %v1046_v28 = vsub.f32 %v73_v12, %v1014_v17  ;;  %v65_v60 = vld [vmem:[#allocation7 + $0x8] sm:$0xff]  ;;  %v64_v1 = vld [vmem:[#allocation7] sm:$0xff] }
  0x14   :  { %v1034_v24 = vand.u32 4294901760, %v1012_v16  ;;  %279 = vmatpush.msra.mxu3 %v993_v4  ;;  %v1040_v26 = vand.u32 4294901760, %v1017_v18  ;;  %v1043_v27 = vand.u32 4294901760, %v1020_v19  ;;  %v1056_v32 = vand.u32 4294901760, %v71_v21 }
  0x15   :  { %227 = vmatpush.msra.mxu2 %v1008_v15  ;;  %85 = vmatpush.msra.mxu0 %v995_v5  ;;  %v124_v29 = vsub.f32 %v1005_v14, %v1028_v22  ;;  %v130_v30 = vsub.f32 %v1008_v15, %v1031_v23  ;;  %v1060_v33 = vand.u32 4294901760, %v1023_v20  ;;  %v1071_v39 = vsub.f32 %v72_v13, %v1036_v25 }
  0x16   :  { %v136_v31 = vsub.f32 %v1012_v16, %v1034_v24  ;;  %281 = vmatpush.msra.mxu3 %v995_v5  ;;  %v142_v38 = vsub.f32 %v1017_v18, %v1040_v26  ;;  %v148_v40 = vsub.f32 %v1020_v19, %v1043_v27  ;;  %v1077_v41 = vand.u32 4294901760, %v1046_v28 }
  0x17   :  { %v1062_v36 = vand.u32 4294901760, %v124_v29  ;;  %230 = vmatpush.msra.mxu2 %v1012_v16  ;;  %87 = vmatpush.msra.mxu0 %v997_v9  ;;  %v1066_v37 = vand.u32 4294901760, %v130_v30  ;;  %v1084_v44 = vsub.f32 %v71_v21, %v1056_v32  ;;  %v1086_v45 = vand.u32 4294901760, %v70_v34 }
  0x18   :  { %283 = vmatpush.msra.mxu3 %v997_v9  ;;  %v1081_v43 = vand.u32 4294901760, %v136_v31  ;;  %v1088_v46 = vand.u32 4294901760, %v69_v35  ;;  %v154_v47 = vsub.f32 %v1023_v20, %v1060_v33  ;;  %v1096_v49 = vand.u32 4294901760, %v142_v38 }
  0x19   :  { %126 = vmatpush.msra.mxu1 %v1062_v36  ;;  %233 = vmatpush.msra.mxu2 %v1017_v18  ;;  %v1099_v50 = vand.u32 4294901760, %v1071_v39  ;;  %v1102_v51 = vsub.f32 %v70_v34, %v1086_v45  ;;  %v1104_v52 = vand.u32 4294901760, %v68_v42  ;;  %v160_v53 = vsub.f32 %v1046_v28, %v1077_v41 }
  0x1a   :  { %89 = vmatpush.msra.mxu0 %v999_v10  ;;  %285 = vmatpush.msra.mxu3 %v999_v10  ;;  %v1112_v55 = vand.u32 4294901760, %v148_v40  ;;  %v1115_v56 = vand.u32 4294901760, %v1084_v44  ;;  %v1118_v57 = vsub.f32 %v69_v35, %v1088_v46  ;;  %v1120_v58 = vand.u32 4294901760, %v67_v48 }
  0x1b   :  { %132 = vmatpush.msra.mxu1 %v1066_v37  ;;  %236 = vmatpush.msra.mxu2 %v1020_v19  ;;  %v1123_v59 = vand.u32 4294901760, %v154_v47  ;;  %v166_v61 = vsub.f32 %v1071_v39, %v1099_v50  ;;  %v1131_v62 = vand.u32 4294901760, %v1102_v51  ;;  %v1134_v63 = vsub.f32 %v68_v42, %v1104_v52 }
  0x1c   :  { %91 = vmatpush.msra.mxu0 %v1001_v11  ;;  %287 = vmatpush.msra.mxu3 %v1001_v11  ;;  %v1136_v0 = vand.u32 4294901760, %v66_v54  ;;  %v1139_v2 = vand.u32 4294901760, %v160_v53  ;;  %v172_v6 = vsub.f32 %v1084_v44, %v1115_v56  ;;  %v1147_v7 = vand.u32 4294901760, %v1118_v57 }
  0x1d   :  { %138 = vmatpush.msra.mxu1 %v1081_v43  ;;  %239 = vmatpush.msra.mxu2 %v1023_v20  ;;  %1407 = vst [vmem:[#allocation12_spill] sm:$0xff] %v1134_v63  ;;  %v1150_v8 = vsub.f32 %v67_v48, %v1120_v58  ;;  %v1152_v12 = vand.u32 4294901760, %v65_v60  ;;  %v1156_v13 = vand.u32 4294901760, %v64_v1  ;;  %v1160_v21 = vand.u32 4294901760, %v166_v61 }
  0x1e   :  { %93 = vmatpush.msra.mxu0 %v1014_v17  ;;  %289 = vmatpush.msra.mxu3 %v1014_v17  ;;  %v178_v29 = vsub.f32 %v1102_v51, %v1131_v62  ;;  %v1165_v30 = vand.u32 4294901760, %v1134_v63  ;;  %v1168_v31 = vsub.f32 %v66_v54, %v1136_v0  ;;  %v1174_v34 = vand.u32 4294901760, %v172_v6 }
  0x1f   :  { %144 = vmatpush.msra.mxu1 %v1096_v49  ;;  %242 = vmatpush.msra.mxu2 %v1046_v28  ;;  %1408 = vst [vmem:[#allocation13_spill] sm:$0xff] %v1150_v8  ;;  %v184_v35 = vsub.f32 %v1118_v57, %v1147_v7  ;;  %v1179_v38 = vand.u32 4294901760, %v1150_v8  ;;  %v1182_v40 = vsub.f32 %v65_v60, %v1152_v12 }
  0x20   :  { %95 = vmatpush.msra.mxu0 %v1036_v25  ;;  %291 = vmatpush.msra.mxu3 %v1036_v25  ;;  %v1188_v42 = vand.u32 4294901760, %v178_v29  ;;  %v190_v47 = vsub.f32 %v1134_v63, %v1165_v30  ;;  %v1193_v48 = vand.u32 4294901760, %v1168_v31  ;;  %v1196_v53 = vsub.f32 %v64_v1, %v1156_v13 }
  0x21   :  { %150 = vmatpush.msra.mxu1 %v1112_v55  ;;  %245 = vmatpush.msra.mxu2 %v1071_v39  ;;  %v1202_v54 = vand.u32 4294901760, %v184_v35  ;;  %v196_v60 = vsub.f32 %v1150_v8, %v1179_v38  ;;  %v1207_v61 = vand.u32 4294901760, %v1182_v40 }
  0x22   :  { %97 = vmatpush.msra.mxu0 %v1056_v32  ;;  %293 = vmatpush.msra.mxu3 %v1056_v32  ;;  %v1213_v1 = vand.u32 4294901760, %v190_v47  ;;  %v202_v6 = vsub.f32 %v1168_v31, %v1193_v48  ;;  %v1218_v29 = vand.u32 4294901760, %v1196_v53 }
  0x23   :  { %156 = vmatpush.msra.mxu1 %v1123_v59  ;;  %248 = vmatpush.msra.mxu2 %v1084_v44  ;;  %v1224_v35 = vand.u32 4294901760, %v196_v60  ;;  %v208_v47 = vsub.f32 %v1182_v40, %v1207_v61 }
  0x24   :  { %99 = vmatpush.msra.mxu0 %v1086_v45  ;;  %295 = vmatpush.msra.mxu3 %v1086_v45 }
  0x25   :  { %162 = vmatpush.msra.mxu1 %v1139_v2  ;;  %251 = vmatpush.msra.mxu2 %v1102_v51  ;;  %v1240_v60 = vand.u32 4294901760, %v208_v47 }
  0x26   :  { %101 = vmatpush.msra.mxu0 %v1088_v46  ;;  %297 = vmatpush.msra.mxu3 %v1088_v46 }
  0x27   :  { %168 = vmatpush.msra.mxu1 %v1160_v21  ;;  %254 = vmatpush.msra.mxu2 %v1118_v57 }
  0x28   :  { %103 = vmatpush.msra.mxu0 %v1104_v52  ;;  %299 = vmatpush.msra.mxu3 %v1104_v52 }
  0x29   :  { %174 = vmatpush.msra.mxu1 %v1174_v34  ;;  %257 = vmatpush.msra.mxu2 %v1134_v63  ;;  %v214_v63 = vsub.f32 %v1196_v53, %v1218_v29 }
  0x2a   :  { %105 = vmatpush.msra.mxu0 %v1120_v58  ;;  %301 = vmatpush.msra.mxu3 %v1120_v58 }
  0x2b   :  { %180 = vmatpush.msra.mxu1 %v1188_v42  ;;  %260 = vmatpush.msra.mxu2 %v1150_v8  ;;  %v1232_v8 = vand.u32 4294901760, %v202_v6  ;;  %v1246_v6 = vand.u32 4294901760, %v214_v63 }
  0x2c   :  { %107 = vmatpush.msra.mxu0 %v1136_v0  ;;  %303 = vmatpush.msra.mxu3 %v1136_v0 }
  0x2d   :  { %186 = vmatpush.msra.mxu1 %v1202_v54  ;;  %263 = vmatpush.msra.mxu2 %v1168_v31 }
  0x2e   :  { %109 = vmatpush.msra.mxu0 %v1152_v12  ;;  %305 = vmatpush.msra.mxu3 %v1152_v12 }
  0x2f   :  { %192 = vmatpush.msra.mxu1 %v1213_v1  ;;  %266 = vmatpush.msra.mxu2 %v1182_v40 }
  0x30   :  { %111 = vmatpush.msra.mxu0 %v1156_v13  ;;  %307 = vmatpush.msra.mxu3 %v1156_v13 }
  0x31   :  { %198 = vmatpush.msra.mxu1 %v1224_v35  ;;  %269 = vmatpush.msra.mxu2 %v1196_v53 }
  0x32   :  { %318 = vmatpush.msrb.mxu0 %v1028_v22  ;;  %468 = vmatpush.msrb.mxu3 %v1062_v36  ;;  %v1264_v36 = vld [vmem:[#allocation2] sm:$0xf] }
  0x33   :  { %423 = vmatpush.msrb.mxu2 %v991_v3  ;;  %204 = vmatpush.msra.mxu1 %v1232_v8  ;;  %v421_v63 = vmul.f32 %v1264_v36, %v1264_v36 }
  0x34   :  { %322 = vmatpush.msrb.mxu0 %v1031_v23  ;;  %474 = vmatpush.msrb.mxu3 %v1066_v37  ;;  %v1273_v37 = vand.u32 4294901760, %v1264_v36 }
  0x35   :  { %425 = vmatpush.msrb.mxu2 %v993_v4  ;;  %210 = vmatpush.msra.mxu1 %v1240_v60 }
  0x36   :  { %326 = vmatpush.msrb.mxu0 %v1034_v24  ;;  %480 = vmatpush.msrb.mxu3 %v1081_v43  ;;  %v113_v43 = vsub.f32 %v1264_v36, %v1273_v37 }
  0x37   :  { %427 = vmatpush.msrb.mxu2 %v995_v5  ;;  %216 = vmatpush.msra.mxu1 %v1246_v6 }
  0x38   :  { %330 = vmatpush.msrb.mxu0 %v1040_v26  ;;  %486 = vmatpush.msrb.mxu3 %v1096_v49  ;;  %v114_v49 = vand.u32 4294901760, %v113_v43 }
  0x39   :  { %385 = vmatpush.msrb.mxu1 %v991_v3  ;;  %429 = vmatpush.msrb.mxu2 %v997_v9 }
  0x3a   :  { %334 = vmatpush.msrb.mxu0 %v1043_v27  ;;  %492 = vmatpush.msrb.mxu3 %v1112_v55  ;;  %v115_v55 = vsub.f32 %v113_v43, %v114_v49 }
  0x3b   :  { %387 = vmatpush.msrb.mxu1 %v993_v4  ;;  %431 = vmatpush.msrb.mxu2 %v999_v10 }
  0x3c   :  { %338 = vmatpush.msrb.mxu0 %v1060_v33  ;;  %498 = vmatpush.msrb.mxu3 %v1123_v59  ;;  %v116_v59 = vand.u32 4294901760, %v115_v55  ;;  %v846_v55 = vld [vmem:[%s1402_s2] ss:$0 sm:$0xff] }
  0x3d   :  { %389 = vmatpush.msrb.mxu1 %v995_v5  ;;  %433 = vmatpush.msrb.mxu2 %v1001_v11 }
  0x3e   :  { %342 = vmatpush.msrb.mxu0 %v1077_v41  ;;  %504 = vmatpush.msrb.mxu3 %v1139_v2  ;;  %v782_v2 = vld [vmem:[#allocation5 + $0x8] sm:$0xff] }
  0x3f   :  { %391 = vmatpush.msrb.mxu1 %v997_v9  ;;  %435 = vmatpush.msrb.mxu2 %v1014_v17 }
  0x40   :  { %346 = vmatpush.msrb.mxu0 %v1099_v50  ;;  %510 = vmatpush.msrb.mxu3 %v1160_v21 }
  0x41   :  { %393 = vmatpush.msrb.mxu1 %v999_v10  ;;  %437 = vmatpush.msrb.mxu2 %v1036_v25 }
  0x42   :  { %350 = vmatpush.msrb.mxu0 %v1115_v56  ;;  %516 = vmatpush.msrb.mxu3 %v1174_v34 }
  0x43   :  { %395 = vmatpush.msrb.mxu1 %v1001_v11  ;;  %439 = vmatpush.msrb.mxu2 %v1056_v32 }
  0x44   :  { %354 = vmatpush.msrb.mxu0 %v1131_v62  ;;  %522 = vmatpush.msrb.mxu3 %v1188_v42 }
  0x45   :  { %397 = vmatpush.msrb.mxu1 %v1014_v17  ;;  %441 = vmatpush.msrb.mxu2 %v1086_v45 }
  0x46   :  { %358 = vmatpush.msrb.mxu0 %v1147_v7  ;;  %528 = vmatpush.msrb.mxu3 %v1202_v54 }
  0x47   :  { %399 = vmatpush.msrb.mxu1 %v1036_v25  ;;  %443 = vmatpush.msrb.mxu2 %v1088_v46 }
  0x48   :  { %362 = vmatpush.msrb.mxu0 %v1165_v30  ;;  %534 = vmatpush.msrb.mxu3 %v1213_v1 }
  0x49   :  { %401 = vmatpush.msrb.mxu1 %v1056_v32  ;;  %445 = vmatpush.msrb.mxu2 %v1104_v52 }
  0x4a   :  { %366 = vmatpush.msrb.mxu0 %v1179_v38  ;;  %540 = vmatpush.msrb.mxu3 %v1224_v35 }
  0x4b   :  { %403 = vmatpush.msrb.mxu1 %v1086_v45  ;;  %447 = vmatpush.msrb.mxu2 %v1120_v58 }
  0x4c   :  { %370 = vmatpush.msrb.mxu0 %v1193_v48  ;;  %546 = vmatpush.msrb.mxu3 %v1232_v8 }
  0x4d   :  { %405 = vmatpush.msrb.mxu1 %v1088_v46  ;;  %449 = vmatpush.msrb.mxu2 %v1136_v0 }
  0x4e   :  { %374 = vmatpush.msrb.mxu0 %v1207_v61  ;;  %552 = vmatpush.msrb.mxu3 %v1240_v60 }
  0x4f   :  { %407 = vmatpush.msrb.mxu1 %v1104_v52  ;;  %451 = vmatpush.msrb.mxu2 %v1152_v12 }
  0x50   :  { %272 = vmatmul.f32.vlgmr.msra.gmra.mxu2 %v113_v43  ;;  %378 = vmatpush.msrb.mxu0 %v1218_v29 }
  0x51   :  { %409 = vmatpush.msrb.mxu1 %v1120_v58  ;;  %453 = vmatpush.msrb.mxu2 %v1156_v13 }
  0x52   :  { %117 = vmatmul.f32.vlgmr.msra.gmra.mxu0 %v116_v59  ;;  %311 = vmatmul.f32.vlgmr.msra.gmra.mxu3 %v114_v49 }
  0x53   :  { %411 = vmatpush.msrb.mxu1 %v1136_v0  ;;  %566 = vmatpush.msra.mxu0 %v1005_v14  ;;  %v1330_v14 = vand.u32 4294901760, %v421_v63 }
  0x54   :  { %660 = vmatpush.msra.mxu2 %v1028_v22  ;;  %558 = vmatpush.msrb.mxu3 %v1246_v6 }
  0x55   :  { %413 = vmatpush.msrb.mxu1 %v1152_v12  ;;  %569 = vmatpush.msra.mxu0 %v1008_v15  ;;  %v796_v15 = vld [vmem:[#allocation5 + $0x78] sm:$0xff] }
  0x56   :  { %218 = vmatmul.f32.vlgmr.msra.gmra.mxu1 %v1273_v37  ;;  %664 = vmatpush.msra.mxu2 %v1031_v23  ;;  %v791_v23 = vld [vmem:[#allocation5 + $0x50] sm:$0xff] }
  0x57   :  { %727 = vmatpush.msra.mxu3 %v991_v3  ;;  %415 = vmatpush.msrb.mxu1 %v1156_v13 }
  0x58   :  { %572 = vmatpush.msra.mxu0 %v1012_v16  ;;  %668 = vmatpush.msra.mxu2 %v1034_v24  ;;  %v795_v16 = vld [vmem:[#allocation5 + $0x70] sm:$0xff] }
  0x59   :  { %619 = vmatpush.msra.mxu1 %v991_v3  ;;  %729 = vmatpush.msra.mxu3 %v993_v4  ;;  %v455_v3 = vsub.f32 %v421_v63, %v1330_v14 }
  0x5a   :  { %575 = vmatpush.msra.mxu0 %v1017_v18  ;;  %672 = vmatpush.msra.mxu2 %v1040_v26  ;;  %v793_v18 = vld [vmem:[#allocation5 + $0x60] sm:$0xff] }
  0x5b   :  { %621 = vmatpush.msra.mxu1 %v993_v4  ;;  %731 = vmatpush.msra.mxu3 %v995_v5  ;;  %v456_v4 = vand.u32 4294901760, %v455_v3 }
  0x5c   :  { %380 = vmatmul.f32.vlgmr.msrb.gmra.mxu0 %v1273_v37  ;;  %676 = vmatpush.msra.mxu2 %v1043_v27 }
  0x5d   :  { %623 = vmatpush.msra.mxu1 %v995_v5  ;;  %578 = vmatpush.msra.mxu0 %v1020_v19  ;;  %v457_v5 = vsub.f32 %v455_v3, %v456_v4 }
  0x5e   :  { %733 = vmatpush.msra.mxu3 %v997_v9  ;;  %417 = vmatmul.f32.vlgmr.msrb.gmra.mxu1 %v1273_v37 }
  0x5f   :  { %581 = vmatpush.msra.mxu0 %v1023_v20  ;;  %625 = vmatpush.msra.mxu1 %v997_v9  ;;  %v458_v9 = vand.u32 4294901760, %v457_v5  ;;  %v792_v20 = vld [vmem:[#allocation5 + $0x58] sm:$0xff] }
  0x60   :  { %680 = vmatpush.msra.mxu2 %v1060_v33  ;;  %735 = vmatpush.msra.mxu3 %v999_v10  ;;  %v788_v33 = vld [vmem:[#allocation5 + $0x38] sm:$0xff] }
  0x61   :  { %584 = vmatpush.msra.mxu0 %v1046_v28  ;;  %627 = vmatpush.msra.mxu1 %v999_v10  ;;  %v1409_v10 = vld [vmem:[#allocation12_spill] sm:$0xff] }
  0x62   :  { %684 = vmatpush.msra.mxu2 %v1077_v41  ;;  %737 = vmatpush.msra.mxu3 %v1001_v11  ;;  %v789_v28 = vld [vmem:[#allocation5 + $0x40] sm:$0xff]  ;;  %v787_v41 = vld [vmem:[#allocation5 + $0x30] sm:$0xff] }
  0x63   :  { %587 = vmatpush.msra.mxu0 %v1071_v39  ;;  %629 = vmatpush.msra.mxu1 %v1001_v11  ;;  %v1410_v11 = vld [vmem:[#allocation13_spill] sm:$0xff] }
  0x64   :  { %688 = vmatpush.msra.mxu2 %v1099_v50  ;;  %739 = vmatpush.msra.mxu3 %v1014_v17 }
  0x65   :  { %590 = vmatpush.msra.mxu0 %v1084_v44  ;;  %631 = vmatpush.msra.mxu1 %v1014_v17  ;;  %v794_v17 = vld [vmem:[#allocation5 + $0x68] sm:$0xff] }
  0x66   :  { %692 = vmatpush.msra.mxu2 %v1115_v56  ;;  %741 = vmatpush.msra.mxu3 %v1036_v25 }
  0x67   :  { %593 = vmatpush.msra.mxu0 %v1102_v51  ;;  %633 = vmatpush.msra.mxu1 %v1036_v25  ;;  %v790_v25 = vld [vmem:[#allocation5 + $0x48] sm:$0xff] }
  0x68   :  { %696 = vmatpush.msra.mxu2 %v1131_v62  ;;  %743 = vmatpush.msra.mxu3 %v1056_v32 }
  0x69   :  { %596 = vmatpush.msra.mxu0 %v1118_v57  ;;  %635 = vmatpush.msra.mxu1 %v1056_v32 }
  0x6a   :  { %700 = vmatpush.msra.mxu2 %v1147_v7  ;;  %745 = vmatpush.msra.mxu3 %v1086_v45 }
  0x6b   :  { %599 = vmatpush.msra.mxu0 %v1409_v10  ;;  %637 = vmatpush.msra.mxu1 %v1086_v45  ;;  %v786_v45 = vld [vmem:[#allocation5 + $0x28] sm:$0xff] }
  0x6c   :  { %704 = vmatpush.msra.mxu2 %v1165_v30  ;;  %747 = vmatpush.msra.mxu3 %v1088_v46 }
  0x6d   :  { %459 = vmatmul.f32.vlgmr.msrb.gmra.mxu2 %v458_v9  ;;  %560 = vmatmul.f32.vlgmr.msrb.gmra.mxu3 %v1330_v14 }
  0x6e   :  { %602 = vmatpush.msra.mxu0 %v1410_v11  ;;  %639 = vmatpush.msra.mxu1 %v1088_v46 }
  0x6f   :  { %708 = vmatpush.msra.mxu2 %v1179_v38  ;;  %749 = vmatpush.msra.mxu3 %v1104_v52 }
  0x70   :  { %605 = vmatpush.msra.mxu0 %v1168_v31  ;;  %641 = vmatpush.msra.mxu1 %v1104_v52  ;;  %v785_v52 = vld [vmem:[#allocation5 + $0x20] sm:$0xff] }
  0x71   :  { %712 = vmatpush.msra.mxu2 %v1193_v48  ;;  %751 = vmatpush.msra.mxu3 %v1120_v58 }
  0x72   :  { %608 = vmatpush.msra.mxu0 %v1182_v40  ;;  %643 = vmatpush.msra.mxu1 %v1120_v58  ;;  %v784_v58 = vld [vmem:[#allocation5 + $0x18] sm:$0xff] }
  0x73   :  { %716 = vmatpush.msra.mxu2 %v1207_v61  ;;  %753 = vmatpush.msra.mxu3 %v1136_v0 }
  0x74   :  { %611 = vmatpush.msra.mxu0 %v1196_v53  ;;  %645 = vmatpush.msra.mxu1 %v1136_v0  ;;  %v783_v0 = vld [vmem:[#allocation5 + $0x10] sm:$0xff] }
  0x75   :  { %720 = vmatpush.msra.mxu2 %v1218_v29  ;;  %755 = vmatpush.msra.mxu3 %v1152_v12 }
  0x76   :  { %614 = vmatmul.f32.vlgmr.msra.gmra.mxu0 %v455_v3  ;;  %722 = vmatmul.f32.vlgmr.msra.gmra.mxu2 %v1330_v14 }
  0x77   :  { %647 = vmatpush.msra.mxu1 %v1152_v12  ;;  %757 = vmatpush.msra.mxu3 %v1156_v13  ;;  %v781_v12 = vld [vmem:[#allocation5] sm:$0xff] }
  0x78   :  { %759 = vmatmul.f32.vlgmr.msra.gmra.mxu3 %v1330_v14  ;;  %801 = vmatpush.msrb.mxu0 %v796_v15 }
  0x79   :  { %649 = vmatpush.msra.mxu1 %v1156_v13 }
  0x7a   :  { %653 = vmatmul.f32.vlgmr.msra.gmra.mxu1 %v456_v4  ;;  %802 = vmatpush.msrb.mxu0 %v795_v16 }
  0x7c   :  { %803 = vmatpush.msrb.mxu0 %v794_v17 }
  0x7e   :  { %804 = vmatpush.msrb.mxu0 %v793_v18 }
  0x80   :  { %805 = vmatpush.msrb.mxu0 %v792_v20 }
  0x82   :  { %806 = vmatpush.msrb.mxu0 %v791_v23 }
  0x84   :  { %807 = vmatpush.msrb.mxu0 %v790_v25 }
  0x86   :  { %808 = vmatpush.msrb.mxu0 %v789_v28 }
  0x88   :  { %809 = vmatpush.msrb.mxu0 %v788_v33 }
  0x8a   :  { %810 = vmatpush.msrb.mxu0 %v787_v41 }
  0x8c   :  { %811 = vmatpush.msrb.mxu0 %v786_v45 }
  0x8e   :  { %812 = vmatpush.msrb.mxu0 %v785_v52 }
  0x90   :  { %813 = vmatpush.msrb.mxu0 %v784_v58 }
  0x92   :  { %814 = vmatpush.msrb.mxu0 %v783_v0 }
  0x94   :  { %815 = vmatpush.msrb.mxu0 %v782_v2 }
  0x96   :  { %816 = vmatpush.msrb.mxu0 %v781_v12 }
  0xcf   :  { %v118_v19 = vpop.f32.mrf.mxu0 }
  0xd3   :  { %v219_v22 = vpop.f32.mrf.mxu1  ;;  %v273_v26 = vpop.f32.mrf.mxu2 }
  0xd4   :  { %v220_v24 = vadd.f32 %v219_v22, %v118_v19 }
  0xd5   :  { %v312_v27 = vpop.f32.mrf.mxu3 }
  0xd6   :  { %v274_v32 = vadd.f32 %v273_v26, %v220_v24 }
  0xd8   :  { %v313_v44 = vadd.f32 %v312_v27, %v274_v32 }
  0xd9   :  { %v381_v39 = vpop.f32.mrf.mxu0 }
  0xda   :  { %v382_v56 = vadd.f32 %v381_v39, %v313_v44 }
  0xdb   :  { %v418_v46 = vpop.f32.mrf.mxu1 }
  0xdc   :  { %v419_v7 = vadd.f32 %v418_v46, %v382_v56 }
  0xde   :  { %v763_v31 = vmul.f32 0.03125, %v419_v7 }
  0xe0   :  { %v765_v42 = vmul.f32 %v763_v31, %v763_v31  ;;  %v768_v37 = vsub.f32 %v1264_v36, %v763_v31 }
  0xf0   :  { %v460_v50 = vpop.f32.mrf.mxu2  ;;  %v561_v51 = vpop.f32.mrf.mxu3 }
  0xf1   :  { %v562_v57 = vadd.f32 %v561_v51, %v460_v50 }
  0xf3   :  { %v615_v62 = vpop.f32.mrf.mxu0 }
  0xf4   :  { %v616_v8 = vadd.f32 %v615_v62, %v562_v57 }
  0xf7   :  { %v654_v13 = vpop.f32.mrf.mxu1 }
  0xf8   :  { %v655_v21 = vadd.f32 %v654_v13, %v616_v8 }
  0xf9   :  { %v723_v30 = vpop.f32.mrf.mxu2 }
  0xfa   :  { %v724_v34 = vadd.f32 %v723_v30, %v655_v21 }
  0xfb   :  { %v760_v38 = vpop.f32.mrf.mxu3 }
  0xfc   :  { %v761_v40 = vadd.f32 %v760_v38, %v724_v34 }
  0xfe   :  { %v764_v48 = vmul.f32 0.03125, %v761_v40 }
 0x100   :  { %v766_v53 = vsub.f32 %v764_v48, %v765_v42 }
 0x102   :  { %v767_v54 = vmax.f32 %v766_v53, 0.0 }
 0x104   :  { %v769_v61 = vadd.f32 1e-06, %v767_v54 }
 0x106   :  { %847 = vrsqrt.f32 %v769_v61  ;;  %vm776_vm1 = vweird.f32 %v769_v61 }
 0x10c   :  { %v848_v1 = vpop.eup %847 }
 0x10d   :  { %v771_v29 = vmul.f32 %v848_v1, %v769_v61  ;;  %vm777_vm0 = vweird.f32 %v848_v1 }
 0x10e   :  { %vm778_vm2 = vmor %vm776_vm1, %vm777_vm0 }
 0x10f   :  { %v772_v35 = vmul.f32 %v848_v1, %v771_v29 }
 0x111   :  { %v773_v47 = vmul.f32 0.5, %v772_v35 }
 0x113   :  { %v774_v60 = vsub.f32 1.5, %v773_v47 }
 0x115   :  { %v775_v6 = vmul.f32 %v848_v1, %v774_v60 }
 0x117   :  { %v779_v43 = vsel %vm778_vm2, %v848_v1, %v775_v6 }
 0x118   :  { %v780_v49 = vmul.f32 %v779_v43, %v768_v37 }
 0x11a   :  { %817 = vmatmul.f32.vlgmr.msrb.gmra.mxu0 %v780_v49 }
 0x197   :  { %v818_v59 = vpop.f32.mrf.mxu0 }
 0x198   :  { %v819_v63 = vadd.f32 %v846_v55, %v818_v59 }
 0x19a   :  { %821 = vst [vmem:[#allocation8] sm:$0xf] %v819_v63 }
 0x19b   :  { %832 = dma.vmem_to_hbm [thread:$0]  %s828_s6, 64, %s830_s9, [#allocation4]  }
 0x19c   :  { %949 = dma.done.wait [#allocation4], 64  }
 0x19d   :  { %950 = vsyncadd [#allocation4], 4294967232 }
 0x19e   :  { %837 = vsyncpa [#allocation3], 1 }
 0x19f   :  { %838 = vsyncpa [#allocation6], 1 }
 0x1a0   :  { %839 = vsyncpa [#allocation4], 1 }

</bundles_post_ra>
